<compile_context>
chip_gen: v7x
topology: tpu7x:2x2x1
jax: 0.10.0
libtpu: 0.0.40
codegen_flags: <defaults>
</compile_context>

<pallas_src>
import functools
import math

import jax
import jax.numpy as jnp
from jax.experimental import pallas as pl
from jax.experimental.pallas import tpu as pltpu

_MiB = 1024 * 1024


# ----------------------------------------------------------------------------
# helpers
# ----------------------------------------------------------------------------
def _round_up(x, m):
    return (x + m - 1) // m * m


def _cdiv(a, b):
    return -(-a // b)


@functools.lru_cache(maxsize=None)
def _vmem_cap():
    # Generation-aware VMEM capacity (128 MiB on v5e/v6e, 64 MiB per TC on v7x).
    try:
        return int(pltpu.get_tpu_info().vmem_capacity_bytes)
    except Exception:
        return 64 * _MiB  # conservative default (v7x-sized)


def _compiler_params(dimension_semantics, block_nbytes):
    # Double-buffered block estimate + fixed headroom, clamped to 75% of physical
    # VMEM so compiler-internal scratch / spill still has room (no double hedging).
    cap = _vmem_cap()
    est = 2 * int(sum(block_nbytes)) + 4 * _MiB
    vmem = int(min(max(est, 32 * _MiB), (3 * cap) // 4))
    return pltpu.CompilerParams(dimension_semantics=dimension_semantics,
                                vmem_limit_bytes=vmem)


def _pick_tm(m, target=512):
    """Row tile: prefer an exact divisor of m (no padding, no end slicing), a
    multiple of 8, <= target, and leaving >= 2 row tiles so both TensorCores of
    a 2-TC part get work.  Fall back to padded ~target-row tiles otherwise."""
    if m <= 8:
        return _round_up(max(m, 1), 8)
    best = 0
    for d in range(min(target, m // 2), 7, -1):
        if m % d == 0 and d % 8 == 0:
            best = d
            break
    if best >= 64 or (best > 0 and m <= 4096):
        return best
    n_tiles = max(2, _cdiv(m, target))
    return _round_up(_cdiv(m, n_tiles), 16)


def _pick_tk(d, target=512):
    # mlp_dim chunk for the streamed MLP path: <= target lanes, a multiple of 128
    # that divides D if possible; otherwise the wrapper zero-pads D to a multiple
    # of `target` (never a silent fully-resident fallback that can blow VMEM).
    if d <= target:
        return d
    for cand in range(target, 127, -128):
        if d % cand == 0:
            return cand
    return target


# ----------------------------------------------------------------------------
# fused [LayerNorm ->] linear [+ GELU] [+ residual] kernel
#   used for: patch embedding (+pos-emb add), LN1+QKV projection, attn-out+residual
# ----------------------------------------------------------------------------
def _fused_linear_kernel(*refs, ln, activation, add_residual, eps):
    idx = 0
    x_ref = refs[idx]; idx += 1
    if ln:
        g_ref = refs[idx]; bln_ref = refs[idx + 1]; idx += 2
    w_ref = refs[idx]; b_ref = refs[idx + 1]; idx += 2
    if add_residual:
        r_ref = refs[idx]; idx += 1
    o_ref = refs[idx]

    x = x_ref[...]
    if ln:
        xf = x.astype(jnp.float32)
        mean = jnp.mean(xf, axis=-1, keepdims=True)
        var = jnp.mean(jnp.square(xf - mean), axis=-1, keepdims=True)
        xn = (xf - mean) * jax.lax.rsqrt(var + eps)
        xn = xn * g_ref[...].astype(jnp.float32) + bln_ref[...].astype(jnp.float32)
        x = xn.astype(x_ref.dtype)               # feed the MXU in native dtype
    y = jnp.dot(x, w_ref[...], preferred_element_type=jnp.float32)
    y = y + b_ref[...].astype(jnp.float32)
    if activation == "gelu":
        y = jax.nn.gelu(y, approximate=False)    # exact erf == torch F.gelu default
    if add_residual:
        y = y + r_ref[...].astype(jnp.float32)   # fused residual / pos-emb add
    o_ref[...] = y.astype(o_ref.dtype)


def fused_linear(x2, w, bias, *, tm, ln=None, residual=None, activation=None, eps=1e-6):
    """(M_pad, K) @ (K, N) + b, optional LN prologue / residual epilogue."""
    m_pad, k_dim = x2.shape
    n_dim = w.shape[1]
    assert m_pad % tm == 0
    n_row_tiles = m_pad // tm
    xi = x2.dtype.itemsize
    wi = w.dtype.itemsize

    in_specs = [pl.BlockSpec((tm, k_dim), lambda i: (i, 0))]
    args = [x2]
    blocks = [tm * k_dim * xi]
    if ln is not None:
        g, bln = ln
        in_specs += [pl.BlockSpec((1, k_dim), lambda i: (0, 0)),
                     pl.BlockSpec((1, k_dim), lambda i: (0, 0))]
        args += [g.reshape(1, k_dim), bln.reshape(1, k_dim)]
        blocks += [2 * k_dim * 4]
    in_specs += [pl.BlockSpec((k_dim, n_dim), lambda i: (0, 0)),
                 pl.BlockSpec((1, n_dim), lambda i: (0, 0))]
    args += [w, bias.reshape(1, n_dim)]
    blocks += [k_dim * n_dim * wi + n_dim * wi]
    if residual is not None:
        in_specs += [pl.BlockSpec((tm, n_dim), lambda i: (i, 0))]
        args += [residual]
        blocks += [tm * n_dim * residual.dtype.itemsize]
    blocks += [tm * n_dim * xi]

    return pl.pallas_call(
        functools.partial(_fused_linear_kernel, ln=ln is not None,
                          activation=activation,
                          add_residual=residual is not None, eps=eps),
        out_shape=jax.ShapeDtypeStruct((m_pad, n_dim), x2.dtype),
        grid_spec=pltpu.PrefetchScalarGridSpec(
            num_scalar_prefetch=0,
            grid=(n_row_tiles,),
            in_specs=in_specs,
            out_specs=pl.BlockSpec((tm, n_dim), lambda i: (i, 0)),
        ),
        compiler_params=_compiler_params(("parallel",), blocks),
    )(*args)


# ----------------------------------------------------------------------------
# standalone LayerNorm (only used for the final encoder norm)
# ----------------------------------------------------------------------------
def _layernorm_kernel(x_ref, g_ref, b_ref, o_ref, *, eps):
    x = x_ref[...].astype(jnp.float32)
    mean = jnp.mean(x, axis=-1, keepdims=True)
    var = jnp.mean(jnp.square(x - mean), axis=-1, keepdims=True)
    y = (x - mean) * jax.lax.rsqrt(var + eps)
    y = y * g_ref[...].astype(jnp.float32) + b_ref[...].astype(jnp.float32)
    o_ref[...] = y.astype(o_ref.dtype)


def layernorm(x2, gamma, beta, *, tm, eps=1e-6):
    m_pad, h = x2.shape
    assert m_pad % tm == 0
    n_row_tiles = m_pad // tm
    xi = x2.dtype.itemsize
    blocks = (2 * tm * h * xi, 2 * h * 4)
    return pl.pallas_call(
        functools.partial(_layernorm_kernel, eps=eps),
        out_shape=jax.ShapeDtypeStruct((m_pad, h), x2.dtype),
        grid_spec=pltpu.PrefetchScalarGridSpec(
            num_scalar_prefetch=0,
            grid=(n_row_tiles,),
            in_specs=[
                pl.BlockSpec((tm, h), lambda i: (i, 0)),
                pl.BlockSpec((1, h), lambda i: (0, 0)),
                pl.BlockSpec((1, h), lambda i: (0, 0)),
            ],
            out_specs=pl.BlockSpec((tm, h), lambda i: (i, 0)),
        ),
        compiler_params=_compiler_params(("parallel",), blocks),
    )(x2, gamma.reshape(1, h), beta.reshape(1, h))


# ----------------------------------------------------------------------------
# attention: one batch element per grid step, all heads in-kernel, (S, H) in/out
# ----------------------------------------------------------------------------
def _attention_kernel(qkv_ref, o_ref, *, num_heads, head_dim, hidden,
                      seq, seq_valid, scale):
    qkv = qkv_ref[...]                       # (S, 3H) for one batch element
    dtype = qkv.dtype
    if seq_valid < seq:
        key_pad = jax.lax.broadcasted_iota(jnp.int32, (seq, seq), 1) >= seq_valid
    outs = []
    for hh in range(num_heads):
        lo = hh * head_dim
        q = qkv[:, lo:lo + head_dim]
        k = qkv[:, hidden + lo:hidden + lo + head_dim]
        v = qkv[:, 2 * hidden + lo:2 * hidden + lo + head_dim]
        # fold scale into q: S x dh multiplies instead of S x S
        qs = (q.astype(jnp.float32) * scale).astype(dtype)
        # contract the last dims directly -> no materialized k transpose
        s = jax.lax.dot_general(qs, k, (((1,), (1,)), ((), ())),
                                preferred_element_type=jnp.float32)
        if seq_valid < seq:
            s = jnp.where(key_pad, -1e30, s)   # mask padded keys
        mx = jnp.max(s, axis=-1, keepdims=True)
        e = jnp.exp(s - mx)
        l = jnp.sum(e, axis=-1, keepdims=True)
        # TODO(synk): attention dropout is identity in eval mode.
        # deferred softmax normalization: divide the (S, dh) context, not (S, S)
        o = jnp.dot(e.astype(dtype), v, preferred_element_type=jnp.float32)
        outs.append(o * (1.0 / l))
    # one lane-dense (S, H) store instead of per-head dh-wide masked stores
    o_ref[...] = jnp.concatenate(outs, axis=-1).astype(o_ref.dtype)


def attention(qkv, *, batch, seq, seq_valid, num_heads, hidden, scale):
    """qkv: (M_pad, 3H) flat, batch-contiguous rows -> context (M_pad, H)."""
    m_pad = qkv.shape[0]
    head_dim = hidden // num_heads
    xi = qkv.dtype.itemsize
    blocks = [seq * 3 * hidden * xi, seq * hidden * xi, 3 * seq * seq * 4]
    # TODO(synk): for S >~ 512 a KV-tiled flash-style (online softmax) path would
    # bound the S^2 temporaries; ViT patch grids keep S small.
    return pl.pallas_call(
        functools.partial(_attention_kernel, num_heads=num_heads, head_dim=head_dim,
                          hidden=hidden, seq=seq, seq_valid=seq_valid, scale=scale),
        out_shape=jax.ShapeDtypeStruct((m_pad, hidden), qkv.dtype),
        grid_spec=pltpu.PrefetchScalarGridSpec(
            num_scalar_prefetch=0,
            grid=(batch,),
            in_specs=[pl.BlockSpec((seq, 3 * hidden), lambda bb: (bb, 0))],
            out_specs=pl.BlockSpec((seq, hidden), lambda bb: (bb, 0)),
        ),
        compiler_params=_compiler_params(("parallel",), blocks),
    )(qkv)


# ----------------------------------------------------------------------------
# fused LayerNorm_2 + MLP (fc1 -> GELU -> fc2) + residual
# ----------------------------------------------------------------------------
def _mlp_kernel_resident(x_ref, g_ref, bln_ref, w1_ref, b1_ref, w2_ref, b2_ref,
                         o_ref, *, eps, approx_gelu):
    xf = x_ref[...].astype(jnp.float32)
    mean = jnp.mean(xf, axis=-1, keepdims=True)
    var = jnp.mean(jnp.square(xf - mean), axis=-1, keepdims=True)
    xn = (xf - mean) * jax.lax.rsqrt(var + eps)
    xn = xn * g_ref[...].astype(jnp.float32) + bln_ref[...].astype(jnp.float32)
    hmid = jnp.dot(xn.astype(x_ref.dtype), w1_ref[...],
                   preferred_element_type=jnp.float32)
    # exact-erf GELU matches torch F.gelu; approximate=True routes to the EUP
    # (bf16-capable on v6e/v7x) when the tolerance budget allows.
    hmid = jax.nn.gelu(hmid + b1_ref[...].astype(jnp.float32), approximate=approx_gelu)
    y = jnp.dot(hmid.astype(w2_ref.dtype), w2_ref[...],
                preferred_element_type=jnp.float32)
    y = y + b2_ref[...].astype(jnp.float32) + xf          # fused residual add
    o_ref[...] = y.astype(o_ref.dtype)


def _mlp_kernel_streamed(x_ref, g_ref, bln_ref, w1_ref, b1_ref, w2_ref, b2_ref,
                         o_ref, acc_ref, xn_ref, *, eps, approx_gelu):
    k = pl.program_id(1)

    @pl.when(k == 0)
    def _init():
        xf = x_ref[...].astype(jnp.float32)
        mean = jnp.mean(xf, axis=-1, keepdims=True)
        var = jnp.mean(jnp.square(xf - mean), axis=-1, keepdims=True)
        xn = (xf - mean) * jax.lax.rsqrt(var + eps)
        xn = xn * g_ref[...].astype(jnp.float32) + bln_ref[...].astype(jnp.float32)
        xn_ref[...] = xn.astype(xn_ref.dtype)   # LN computed once per row tile
        acc_ref[...] = jnp.zeros_like(acc_ref)

    hmid = jnp.dot(xn_ref[...], w1_ref[...], preferred_element_type=jnp.float32)
    hmid = jax.nn.gelu(hmid + b1_ref[...].astype(jnp.float32), approximate=approx_gelu)
    # TODO(synk): dropout after GELU / after fc2 is identity in eval mode.
    acc_ref[...] += jnp.dot(hmid.astype(w2_ref.dtype), w2_ref[...],
                            preferred_element_type=jnp.float32)

    @pl.when(k == pl.num_programs(1) - 1)
    def _finalize():
        y = acc_ref[...] + b2_ref[...].astype(jnp.float32) + x_ref[...].astype(jnp.float32)
        o_ref[...] = y.astype(o_ref.dtype)


def mlp_forward(x2, ln_g, ln_b, w1, b1, w2, b2, *, tm, eps=1e-6,
                approximate_gelu=False):
    """(M_pad, H) -> (M_pad, H): x + fc2(gelu(fc1(LN(x))))."""
    m_pad, h_dim = x2.shape
    d_dim = w1.shape[1]
    assert m_pad % tm == 0
    n_row_tiles = m_pad // tm
    xi = x2.dtype.itemsize
    wi = w1.dtype.itemsize

    weight_bytes = (h_dim * d_dim + d_dim + d_dim * h_dim + h_dim) * wi
    act_bytes = 4 * tm * h_dim * xi + tm * d_dim * 4 + tm * h_dim * 4
    if 2 * weight_bytes + act_bytes <= _vmem_cap() // 2:
        # Weights fully resident: constant index maps -> DMA'd once across all
        # row tiles; no reduction axis, no accumulator, no per-k overhead.
        blocks = [tm * h_dim * xi, 2 * h_dim * 4, weight_bytes,
                  tm * h_dim * xi, tm * d_dim * 4]
        return pl.pallas_call(
            functools.partial(_mlp_kernel_resident, eps=eps,
                              approx_gelu=approximate_gelu),
            out_shape=jax.ShapeDtypeStruct((m_pad, h_dim), x2.dtype),
            grid_spec=pltpu.PrefetchScalarGridSpec(
                num_scalar_prefetch=0,
                grid=(n_row_tiles,),
                in_specs=[
                    pl.BlockSpec((tm, h_dim), lambda i: (i, 0)),
                    pl.BlockSpec((1, h_dim), lambda i: (0, 0)),
                    pl.BlockSpec((1, h_dim), lambda i: (0, 0)),
                    pl.BlockSpec((h_dim, d_dim), lambda i: (0, 0)),
                    pl.BlockSpec((1, d_dim), lambda i: (0, 0)),
                    pl.BlockSpec((d_dim, h_dim), lambda i: (0, 0)),
                    pl.BlockSpec((1, h_dim), lambda i: (0, 0)),
                ],
                out_specs=pl.BlockSpec((tm, h_dim), lambda i: (i, 0)),
            ),
            compiler_params=_compiler_params(("parallel",), blocks),
        )(x2, ln_g.reshape(1, h_dim), ln_b.reshape(1, h_dim),
          w1, b1.reshape(1, d_dim), w2, b2.reshape(1, h_dim))

    # Streamed path: mlp_dim walked in tk-wide chunks, f32 accumulator in VMEM.
    tk = _pick_tk(d_dim)
    if d_dim % tk:
        # zero-padding extra fc1 columns / fc2 rows is exact (gelu(0)*0 contributes 0)
        d_pad = _round_up(d_dim, tk)
        w1 = jnp.pad(w1, ((0, 0), (0, d_pad - d_dim)))
        b1 = jnp.pad(b1, ((0, d_pad - d_dim),))
        w2 = jnp.pad(w2, ((0, d_pad - d_dim), (0, 0)))
        d_dim = d_pad
    n_k = d_dim // tk
    blocks = [tm * h_dim * xi, 2 * h_dim * 4,
              h_dim * tk * wi + tk * wi, tk * h_dim * wi + h_dim * wi,
              tm * h_dim * xi, tm * h_dim * 4, tm * h_dim * xi, tm * tk * 4]
    return pl.pallas_call(
        functools.partial(_mlp_kernel_streamed, eps=eps,
                          approx_gelu=approximate_gelu),
        out_shape=jax.ShapeDtypeStruct((m_pad, h_dim), x2.dtype),
        grid_spec=pltpu.PrefetchScalarGridSpec(
            num_scalar_prefetch=0,
            grid=(n_row_tiles, n_k),              # reduction axis (mlp_dim) last
            in_specs=[
                pl.BlockSpec((tm, h_dim), lambda i, k: (i, 0)),
                pl.BlockSpec((1, h_dim), lambda i, k: (0, 0)),
                pl.BlockSpec((1, h_dim), lambda i, k: (0, 0)),
                pl.BlockSpec((h_dim, tk), lambda i, k: (0, k)),
                pl.BlockSpec((1, tk), lambda i, k: (0, k)),
                pl.BlockSpec((tk, h_dim), lambda i, k: (k, 0)),
                pl.BlockSpec((1, h_dim), lambda i, k: (0, 0)),
            ],
            out_specs=pl.BlockSpec((tm, h_dim), lambda i, k: (i, 0)),
            scratch_shapes=[pltpu.VMEM((tm, h_dim), jnp.float32),
                            pltpu.VMEM((tm, h_dim), x2.dtype)],
        ),
        compiler_params=_compiler_params(("parallel", "arbitrary"), blocks),
    )(x2, ln_g.reshape(1, h_dim), ln_b.reshape(1, h_dim),
      w1, b1.reshape(1, d_dim), w2, b2.reshape(1, h_dim))


# ----------------------------------------------------------------------------
# full Transformer forward (Embeddings -> Encoder blocks -> encoder LayerNorm)
# ----------------------------------------------------------------------------
def transformer_forward(x_img, params, *, patch_size, num_heads):
    # TODO(synk): hybrid ResNetV2 backbone path (config.patches['grid']) is not
    # implemented; this is the pure patch-embedding ViT path (hybrid=False).
    b, c, hi, wi = x_img.shape
    p = patch_size
    gh, gw = hi // p, wi // p
    s_len = gh * gw
    h_dim = params["patch_w"].shape[1]
    dh = h_dim // num_heads
    scale = 1.0 / math.sqrt(dh)

    s_pad = _round_up(s_len, 8)            # sublane alignment for the attention block
    m = b * s_pad
    tm = _pick_tm(m)
    m_pad = _cdiv(m, tm) * tm              # == m whenever an exact-divisor tile exists

    # Conv2d(kernel=stride=patch) == non-overlapping patch extraction + dense.
    patches = (x_img.reshape(b, c, gh, p, gw, p)
               .transpose(0, 2, 4, 1, 3, 5)
               .reshape(b, s_len, c * p * p))
    pos = params["pos_emb"]
    if s_pad != s_len:
        patches = jnp.pad(patches, ((0, 0), (0, s_pad - s_len), (0, 0)))
        pos = jnp.pad(pos, ((0, 0), (0, s_pad - s_len), (0, 0)))
    patches = patches.reshape(m, c * p * p)
    pos_full = jnp.broadcast_to(pos, (b, s_pad, h_dim)).reshape(m, h_dim)
    if m_pad != m:
        # token dim padded ONCE; all layers run on the padded activation.
        patches = jnp.pad(patches, ((0, m_pad - m), (0, 0)))
        pos_full = jnp.pad(pos_full, ((0, m_pad - m), (0, 0)))

    # patch embedding; position-embedding add fused in as the residual input
    # (embedding dropout = identity in eval mode)
    h = fused_linear(patches, params["patch_w"], params["patch_b"],
                     residual=pos_full, tm=tm)

    for layer in params["layers"]:
        # fused LayerNorm_0 + QKV projection: one (H, 3H) matmul, xn read once
        wqkv = jnp.concatenate([layer["wq"], layer["wk"], layer["wv"]], axis=1)
        bqkv = jnp.concatenate([layer["bq"], layer["bk"], layer["bv"]])
        qkv = fused_linear(h, wqkv, bqkv, ln=(layer["ln1_g"], layer["ln1_b"]), tm=tm)
        # all heads of one batch element per grid step; (S, H)-layout in and out
        ctx = attention(qkv, batch=b, seq=s_pad, seq_valid=s_len,
                        num_heads=num_heads, hidden=h_dim, scale=scale)
        # attention output projection with the residual add fused in the epilogue
        h = fused_linear(ctx, layer["wo"], layer["bo"], residual=h, tm=tm)
        # fused LayerNorm_2 + MLP + residual
        h = mlp_forward(h, layer["ln2_g"], layer["ln2_b"],
                        layer["w1"], layer["b1"], layer["w2"], layer["b2"], tm=tm)

    encoded = layernorm(h, params["enc_g"], params["enc_b"], tm=tm)
    encoded = encoded[:m].reshape(b, s_pad, h_dim)[:, :s_len, :]   # single end slice
    # TODO(synk): vis=True attention-weight maps are not materialized by the fused
    # attention kernel; vis=False path returns an empty list.  features=None (non-hybrid).
    return encoded, [], None


# ----------------------------------------------------------------------------
# pure-JAX reference (mirrors the PyTorch eval-mode forward)
# ----------------------------------------------------------------------------
def _layernorm_ref(x, g, bias, eps=1e-6):
    mean = jnp.mean(x, axis=-1, keepdims=True)
    var = jnp.mean(jnp.square(x - mean), axis=-1, keepdims=True)
    return (x - mean) * jax.lax.rsqrt(var + eps) * g + bias


def transformer_ref(x_img, params, *, patch_size, num_heads):
    b, c, hi, wi = x_img.shape
    p = patch_size
    gh, gw = hi // p, wi // p
    s_len = gh * gw
    h_dim = params["patch_w"].shape[1]
    dh = h_dim // num_heads
    scale = 1.0 / math.sqrt(dh)

    patches = (x_img.reshape(b, c, gh, p, gw, p)
               .transpose(0, 2, 4, 1, 3, 5)
               .reshape(b, s_len, c * p * p))
    h = patches @ params["patch_w"] + params["patch_b"] + params["pos_emb"]

    for layer in params["layers"]:
        resid = h
        xn = _layernorm_ref(h, layer["ln1_g"], layer["ln1_b"])
        q = xn @ layer["wq"] + layer["bq"]
        k = xn @ layer["wk"] + layer["bk"]
        v = xn @ layer["wv"] + layer["bv"]

        def split(t):
            return t.reshape(b, s_len, num_heads, dh).transpose(0, 2, 1, 3)

        qh, kh, vh = split(q), split(k), split(v)
        scores = jnp.einsum("bhqd,bhkd->bhqk", qh, kh) * scale
        probs = jax.nn.softmax(scores, axis=-1)
        ctx = jnp.einsum("bhqk,bhkd->bhqd", probs, vh)
        ctx = ctx.transpose(0, 2, 1, 3).reshape(b, s_len, h_dim)
        h = resid + (ctx @ layer["wo"] + layer["bo"])

        resid = h
        xn = _layernorm_ref(h, layer["ln2_g"], layer["ln2_b"])
        ffn = (jax.nn.gelu(xn @ layer["w1"] + layer["b1"], approximate=False)
               @ layer["w2"] + layer["b2"])
        h = resid + ffn

    return _layernorm_ref(h, params["enc_g"], params["enc_b"])


# ----------------------------------------------------------------------------
# main
# ----------------------------------------------------------------------------
if __name__ == "__main__":
    # Small config consistent with the module: 16x16 RGB image, 4x4 patches
    # (-> 16 tokens), hidden_size=32, 4 heads, mlp_dim=64, 2 encoder layers.
    B, C, IMG, P = 2, 3, 16, 4
    HID, HEADS, MLP_DIM, LAYERS = 32, 4, 64, 2
    S = (IMG // P) ** 2

    keys = iter(jax.random.split(jax.random.PRNGKey(0), 64))

    def nxt():
        return next(keys)

    def xavier(k, fan_in, fan_out):
        limit = math.sqrt(6.0 / (fan_in + fan_out))
        return jax.random.uniform(k, (fan_in, fan_out), jnp.float32,
                                  minval=-limit, maxval=limit)

    x_img = jax.random.normal(nxt(), (B, C, IMG, IMG), jnp.float32)

    params = {
        "patch_w": xavier(nxt(), C * P * P, HID),   # Conv2d(kernel=stride=P) as dense (in, out)
        "patch_b": 1e-2 * jax.random.normal(nxt(), (HID,), jnp.float32),
        "pos_emb": 2e-2 * jax.random.normal(nxt(), (1, S, HID), jnp.float32),
        "enc_g": 1.0 + 0.1 * jax.random.normal(nxt(), (HID,), jnp.float32),
        "enc_b": 0.1 * jax.random.normal(nxt(), (HID,), jnp.float32),
        "layers": [],
    }
    for _ in range(LAYERS):
        params["layers"].append({
            "ln1_g": 1.0 + 0.1 * jax.random.normal(nxt(), (HID,), jnp.float32),
            "ln1_b": 0.1 * jax.random.normal(nxt(), (HID,), jnp.float32),
            "wq": xavier(nxt(), HID, HID),
            "bq": 1e-2 * jax.random.normal(nxt(), (HID,), jnp.float32),
            "wk": xavier(nxt(), HID, HID),
            "bk": 1e-2 * jax.random.normal(nxt(), (HID,), jnp.float32),
            "wv": xavier(nxt(), HID, HID),
            "bv": 1e-2 * jax.random.normal(nxt(), (HID,), jnp.float32),
            "wo": xavier(nxt(), HID, HID),
            "bo": 1e-2 * jax.random.normal(nxt(), (HID,), jnp.float32),
            "ln2_g": 1.0 + 0.1 * jax.random.normal(nxt(), (HID,), jnp.float32),
            "ln2_b": 0.1 * jax.random.normal(nxt(), (HID,), jnp.float32),
            "w1": xavier(nxt(), HID, MLP_DIM),
            "b1": 1e-6 * jax.random.normal(nxt(), (MLP_DIM,), jnp.float32),
            "w2": xavier(nxt(), MLP_DIM, HID),
            "b2": 1e-6 * jax.random.normal(nxt(), (HID,), jnp.float32),
        })

    encoded, attn_weights, features = transformer_forward(
        x_img, params, patch_size=P, num_heads=HEADS)
    encoded = jax.block_until_ready(encoded)

    ref = transformer_ref(x_img, params, patch_size=P, num_heads=HEADS)
    assert encoded.shape == (B, S, HID)
    assert jnp.allclose(encoded, ref, atol=1e-4, rtol=1e-4), (
        "max abs err = " + str(float(jnp.max(jnp.abs(encoded - ref)))))

    print("KERNEL_OK")
</pallas_src>

<mosaic_0001>
module attributes {stable_mosaic.version = 11 : i64} {
  func.func @_fused_linear_kernel(%arg0: i32, %arg1: memref<16x48xf32, #tpu.memory_space<vmem>>, %arg2: memref<48x32xf32, #tpu.memory_space<vmem>>, %arg3: memref<1x32xf32, #tpu.memory_space<vmem>>, %arg4: memref<16x32xf32, #tpu.memory_space<vmem>>, %arg5: memref<16x32xf32, #tpu.memory_space<vmem>>) attributes {dimension_semantics = [#tpu.dimension_semantics<parallel>], iteration_bounds = array<i64: 2>, scalar_prefetch = 0 : i64, scratch_operands = 0 : i64, tpu.core_type = #tpu.core_type<tc>, window_params = [{transform_indices = @transform_0, window_bounds = array<i64: 16, 48>}, {pipeline_mode = #tpu.pipeline_mode<synchronous>, transform_indices = @transform_1, window_bounds = array<i64: 48, 32>}, {pipeline_mode = #tpu.pipeline_mode<synchronous>, transform_indices = @transform_2, window_bounds = array<i64: 1, 32>}, {transform_indices = @transform_3, window_bounds = array<i64: 16, 32>}, {transform_indices = @transform_4, window_bounds = array<i64: 16, 32>}]} {
    %c0 = arith.constant 0 : index
    %c0_0 = arith.constant 0 : index
    %0 = vector.load %arg1[%c0, %c0_0] : memref<16x48xf32, #tpu.memory_space<vmem>>, vector<16x48xf32>
    %c0_1 = arith.constant 0 : index
    %c0_2 = arith.constant 0 : index
    %1 = vector.load %arg2[%c0_1, %c0_2] : memref<48x32xf32, #tpu.memory_space<vmem>>, vector<48x32xf32>
    %cst = arith.constant dense<0.000000e+00> : vector<16x32xf32>
    %2 = tpu.matmul %0, %1, %cst {dimension_numbers = #tpu.dot_dimension_numbers<[1], [0], [0], [1], [0, 0, 1, 1], [], []>} : vector<16x48xf32>, vector<48x32xf32>, vector<16x32xf32> -> vector<16x32xf32>
    %c0_3 = arith.constant 0 : index
    %c0_4 = arith.constant 0 : index
    %3 = vector.load %arg3[%c0_3, %c0_4] : memref<1x32xf32, #tpu.memory_space<vmem>>, vector<1x32xf32>
    %4 = vector.broadcast %3 : vector<1x32xf32> to vector<16x32xf32>
    %5 = arith.addf %2, %4 : vector<16x32xf32>
    %c0_5 = arith.constant 0 : index
    %c0_6 = arith.constant 0 : index
    %6 = vector.load %arg4[%c0_5, %c0_6] : memref<16x32xf32, #tpu.memory_space<vmem>>, vector<16x32xf32>
    %7 = arith.addf %5, %6 : vector<16x32xf32>
    %c0_7 = arith.constant 0 : index
    %c0_8 = arith.constant 0 : index
    %8 = vector.load %arg5[%c0_7, %c0_8] : memref<16x32xf32, #tpu.memory_space<vmem>>, vector<16x32xf32>
    tpu.vector_store %arg5[%c0_7, %c0_8], %7 {strides = array<i32>} : memref<16x32xf32, #tpu.memory_space<vmem>>, vector<16x32xf32>,
    return
  }
  func.func @transform_0(%arg0: i32) -> (i32, i32) {
    %c0_i32 = arith.constant 0 : i32
    %c0_i32_0 = arith.constant 0 : i32
    return %arg0, %c0_i32 : i32, i32
  }
  func.func @transform_1(%arg0: i32) -> (i32, i32) {
    %c0_i32 = arith.constant 0 : i32
    %c0_i32_0 = arith.constant 0 : i32
    %c0_i32_1 = arith.constant 0 : i32
    return %c0_i32, %c0_i32_0 : i32, i32
  }
  func.func @transform_2(%arg0: i32) -> (i32, i32) {
    %c0_i32 = arith.constant 0 : i32
    %c0_i32_0 = arith.constant 0 : i32
    %c0_i32_1 = arith.constant 0 : i32
    return %c0_i32, %c0_i32_0 : i32, i32
  }
  func.func @transform_3(%arg0: i32) -> (i32, i32) {
    %c0_i32 = arith.constant 0 : i32
    %c0_i32_0 = arith.constant 0 : i32
    return %arg0, %c0_i32 : i32, i32
  }
  func.func @transform_4(%arg0: i32) -> (i32, i32) {
    %c0_i32 = arith.constant 0 : i32
    %c0_i32_0 = arith.constant 0 : i32
    return %arg0, %c0_i32 : i32, i32
  }
}

</mosaic_0001>

<bundles_post_ra>
// kernel: tpu_custom_call.1
= control target key start
LH: loop header
LB: loop body
LE: loop exit
PB: predicated region body
PF: predicated region fallthrough
CT: control target
= control target key end

     0   :  { %9 = vsyncpa [#allocation3], 0  ;;  %s725_s0 = inlined_call_operand.vmem [shape: f32[32,48], index: 0, kind: input, shape index: {}]   ;;  %s726_s1 = inlined_call_operand.vmem [shape: f32[48,32], index: 1, kind: input, shape index: {}]   ;;  %s727_s2 = inlined_call_operand.vmem [shape: f32[1,32], index: 2, kind: input, shape index: {}]   ;;  %s728_s3 = inlined_call_operand.vmem [shape: f32[32,32], index: 3, kind: input, shape index: {}]   ;;  %s729_s4 = inlined_call_operand.hbm [shape: f32[32,32], index: 4, kind: output, shape index: {}]  }
   0x1   :  { %11 = vsyncpa [#allocation3 + $0x1], 0  ;;  %s599_s15 = smov 0   ;;  %s601_s16 = smov 0  }
   0x2   :  { %s603_s17 = smov 0   ;;  %s605_s18 = smov 0  }
   0x3 LB: > { %s620_s19 = sadd.s32 4294967295, %s569_s18   ;;  %s413_s20 = sadd.s32 4294967294, %s569_s18   ;;  %s569_s18 = sphi %s605_s18, %s735_s18   ;;  %s565_s17 = sphi %s603_s17, %s734_s17   ;;  %s561_s16 = sphi %s601_s16, %s733_s16   ;;  %s557_s15 = sphi %s599_s15, %s732_s15  }
   0x4   : > { %s624_s21 = sadd.s32 1, %s569_s18   ;;  %s118_s22 = sadd.s32 1, %s565_s17 }
   0x5   : > { %s115_s23 = ssub.s32 %s569_s18, %s624_s21  ;;  %p128_p0 = scmp.ne.s32.totalorder %s565_s17, %s561_s16 }
   0x6   : > { %p116_p1 = scmp.eq.s32.totalorder %s115_s23, 0  ;;  %p129_p2 = scmp.eq.s32.totalorder %s620_s19, 1 }
   0x7   : > { %p134_p3 = scmp.ne.s32.totalorder %s561_s16, %s557_s15  ;;  %p135_p4 = scmp.eq.s32.totalorder %s413_s20, 1 }
   0x8   : > { %s635_s24 = scalar_select %p116_p1, %s565_s17, %s118_s22  }
   0x9   : > { %p637_p5 = por %p129_p2, %p128_p0  ;;  %p641_p6 = por %p135_p4, %p134_p3 }
   0xa   : > { %p416_p7 = scmp.ge.s32.totalorder %s569_s18, 1  ;;  %p177_p8 = scmp.lt.s32.totalorder %s569_s18, 3 }
   0xc   : > { %p178_p9 = pnand %p416_p7, %p177_p8 }
   0xd   : > { %v223_v0 = vld [vmem:[%s726_s1] sm:$0xff] (!%p178_p9)  ;;  %v224_v1 = vld [vmem:[%s726_s1 + $0x8] sm:$0xff] (!%p178_p9)  ;;  %v225_v2 = vld [vmem:[%s726_s1 + $0x10] sm:$0xff] (!%p178_p9)  ;;  %s418_s7 = sshll.u32 (!%p178_p9), %s620_s19, 1  ;;  %vm236_vm0 = vcmask (!%p178_p9), 392192   ;;  %s205_s27 = sand.u32 (!%p178_p9), 1, %s561_s16  }
   0xe   : > { %181 = sbr.rel (%p178_p9) target bundleno = 260 (0x104), region = 36  ;;  %v454_v3 = vpack.c.bf16 (!%p178_p9), %v224_v1, %v223_v0  ;;  %v226_v4 = vld [vmem:[%s726_s1 + $0x18] sm:$0xff] (!%p178_p9)  ;;  %p209_p10 = scmp.lt.s32.totalorder (!%p178_p9), %s418_s7, 3  ;;  %v227_v6 = vld [vmem:[%s726_s1 + $0x20] sm:$0xff] (!%p178_p9)  ;;  %v228_v7 = vld [vmem:[%s726_s1 + $0x28] sm:$0xff] (!%p178_p9)  ;;  %vm322_vm1 = vcmask (!%p178_p9), 261120  }
   0xf   : > { %v458_v5 = vpack.c.bf16 (!%p178_p9), %v226_v4, %v225_v2  ;;  %v462_v8 = vpack.c.bf16 (!%p178_p9), %v228_v7, %v227_v6  ;;  %s417_s28 = sshll.u32 (!%p178_p9), %s205_s27, 4  ;;  %v422_v11 = vld [vmem:[%s727_s2] ss:$0 sm:$0xff] (!%p178_p9)  ;;  %s430_s10 = sshll.u32 (!%p178_p9), %s620_s19, 8 }
  0x10   : > { %455 = vmatprep.subr.bf16.mxu0 (!%p178_p9), %v454_v3  ;;  %s207_s8 = scalar_lea.vmem (!%p178_p9), [#allocation2], %s417_s28  ;;  %s680_s13 = scalar_lea.hbm (!%p178_p9), %s729_s4, %s430_s10 }
  0x11   : > { %457 = vmatpush3.bf16.msra.mxu0 (!%p178_p9), %v454_v3  ;;  %s339_s9 = sshll.u32 (!%p178_p9), %s207_s8, 4  ;;  %s684_s19 = scalar_lea.sflag (!%p178_p9), [#allocation3], %s205_s27  ;;  %s682_s9 = int_to_ptr.vmem [resolvable:$true] %s339_s9 }
  0x12   : > { %459 = vmatprep.subr.bf16.mxu0 (!%p178_p9), %v458_v5  ;;  %s571_s20 = smov (!%p178_p9), [#allocation2]  }
  0x13   : > { %s511_s22 = sshll.u32 (!%p178_p9), %s571_s20, 4  ;;  %s512_s22 = int_to_ptr.vmem [resolvable:$false] %s511_s22 }
  0x14   : > { %p514_p0 = scmp.lt.s32.totalorder (!%p178_p9), %s682_s9, %s512_s22 }
  0x15   : > { %s737_s7 = smov (!%p209_p10, %s418_s7), 3  ;;  %461 = vmatpush3.bf16.msra.mxu0 %v458_v5 }
  0x16   : > { %s419_s14 = sshll.u32 %s737_s7, 3  ;;  %463 = vmatprep.subr.bf16.mxu0 %v462_v8 }
  0x17   : > { %s212_s23 = scalar_lea.vmem %s725_s0, %s419_s14  ;;  %s218_s5 = scalar_lea.vmem %s728_s3, %s419_s14 }
  0x18   : > { %v221_v9 = vld [vmem:[%s212_s23] sm:$0xff]  ;;  %v222_v10 = vld [vmem:[%s212_s23 + $0x8] sm:$0xff]  ;;  %s507_s14 = scalar_lea.vmem %s682_s9, 256  ;;  %s513_s23 = scalar_lea.vmem %s512_s22, 512 }
  0x19   : > { %451 = vmatprep.mubr.msk.f32.mxu0 %vm236_vm0, %v221_v9  ;;  %465 = vmatpush3.bf16.msra.mxu0 %v462_v8  ;;  %v319_v13 = vld [vmem:[%s218_s5 + $0x8] sm:$0xff]  ;;  %v318_v16 = vld [vmem:[%s218_s5] sm:$0xff]  ;;  %p508_p11 = scmp.ne.s32.totalorder %s682_s9, %s507_s14  ;;  %p515_p1 = scmp.lt.s32.totalorder %s513_s23, %s507_s14 }
  0x1b   : > { %p509_p12 = pnand %p508_p11, %p637_p5  ;;  %p516_p2 = por %p515_p1, %p514_p0 }
  0x1c   : > { %452 = vmatmul.mubr.msk.f32.vlgmr.msra.gmra.mrb[0].mxu0 %vm236_vm0, %v222_v10 }
  0x1d   : > { %p510_p13 = pneg %p509_p12 }
  0x1f   : > { %p517_p3 = pnand %p516_p2, %p510_p13 }
  0xef   : > { %v453_v12 = vpop.f32.mrb[0].mxu0 }
  0xf0   : > { %v315_v14 = vadd.f32 %v453_v12, %v422_v11  ;;  %v309_v15 = vpop.f32.mrb[1].mxu0 }
  0xf1   : > { %v310_v17 = vadd.f32 %v422_v11, %v309_v15 }
  0xf2   : > { %v321_v18 = vadd.f32 %v319_v13, %v315_v14 }
  0xf3   : > { %v320_v19 = vadd.f32 %v318_v16, %v310_v17 }
  0xf4   : > { %324 = vst.msk [vmem:[%s207_s8 + $0x8] sm:$0xff] %vm322_vm1, %v321_v18 }
  0xf5   : > { %323 = vst.msk [vmem:[%s207_s8] sm:$0xff] %vm322_vm1, %v320_v19 }
  0xf6   : > { %520 = shalt.err (!%p517_p3)
}
  0xf7   : > { %s521_s27 = scalar_lea.hbm %s680_s13, 256  ;;  %s525_s30 = scalar_lea.hbm %s729_s4, 512 }
  0xf8   : > { %p522_p4 = scmp.ne.s32.totalorder %s680_s13, %s521_s27  ;;  %p526_p9 = scmp.lt.u32.totalorder %s680_s13, %s729_s4 }
  0xf9   : > { %p527_p10 = scmp.lt.u32.totalorder %s525_s30, %s521_s27  ;;  %p529_p12 = scmp.lt.u32.totalorder %s521_s27, %s680_s13 }
  0xfa   : > { %p523_p7 = pnand %p522_p4, %p637_p5 }
  0xfb   : > { %p528_p11 = por %p527_p10, %p526_p9 }
  0xfc   : > { %p524_p8 = pneg %p523_p7 }
  0xfd   : > { %p530_p13 = por %p529_p12, %p528_p11 }
  0xff   : > { %p531_p0 = pnand %p530_p13, %p524_p8 }
 0x101   : > { %534 = shalt.err (!%p531_p0)
}
 0x102   : > { %s572_s7 = smov 128   ;;  %s573_s8 = smov 8  }
 0x103   : > { %466 = dma.vmem_to_hbm [thread:$0]  (%p637_p5), %s682_s9, 256, %s680_s13, %s684_s19, %s572_s7, %s572_s7, %s573_s8  }
 0x104 PF: > { %p472_p1 = scmp.ge.s32.totalorder %s569_s18, 2  ;;  %s354_s10 = sand.u32 1, %s557_s15  }
 0x105   : > { %s355_s11 = scalar_lea.sflag [#allocation3], %s354_s10 }
 0x106   : > { %p469_p2 = pnand %p472_p1, %p641_p6 }
 0x108   : > { %552 = dma.done.wait (!%p469_p2), %s355_s11, 256  }
 0x109   : > { %554 = vsyncadd (!%p469_p2), %s355_s11, 4294967040  ;;  %p14_p3 = scmp.ge.s32.totalorder %s624_s21, 4   ;;  %s732_s15 = smov %s561_s16 }
 0x10a   : > { %s733_s16 = smov %s565_s17  ;;  %s734_s17 = smov %s635_s24 }
 0x10b   : > { %s735_s18 = smov %s624_s21  ;;  %16 = sbr.rel (!%p14_p3) target bundleno = 3 (0x3), region = 74 }
 0x112   :  { %360 = vsyncpa [#allocation3], 1 }
 0x113   :  { %362 = vsyncpa [#allocation3 + $0x1], 1 }

</bundles_post_ra>
